<compile_context>
chip_gen: v6e
topology: v6e:2x2x1
jax: 0.10.0
libtpu: 0.0.40
codegen_flags: <defaults>
</compile_context>

<pallas_src>
import functools

import jax
import jax.numpy as jnp
from jax.experimental import pallas as pl
from jax.experimental.pallas import tpu as pltpu


def _round_up(x, m):
    return (x + m - 1) // m * m


# ----------------------------- tile selection --------------------------------

def _pick_k_tile(k):
    """Return (padded K, K tile). Small K -> single full-K block (e.g. stem K=27->32)."""
    if k <= 512:
        kp = _round_up(k, 32)
        return kp, kp
    if k <= 2048:
        return _round_up(k, 256), 256      # 256-aligned K tiles (v6e/v7x MXU)
    return _round_up(k, 512), 512


def _pick_n_tile(cout):
    np128 = _round_up(cout, 128)
    if np128 >= 256 and np128 % 256 == 0:
        return 256                          # match 256x256 MXU on v6e/v7x
    return 128


def _pick_m_tile(m):
    return min(512, _round_up(m, 8))


# ----------------------------- Pallas kernels -------------------------------

def _conv_matmul_kernel(x_ref, w_ref, b_ref, o_ref, acc_ref):
    """Tiled bf16 matmul (im2col conv, BN scale pre-folded into W) + bias + ReLU6."""
    @pl.when(pl.program_id(2) == 0)
    def _():
        acc_ref[...] = jnp.zeros_like(acc_ref)

    acc_ref[...] += jnp.dot(x_ref[...], w_ref[...],
                            preferred_element_type=jnp.float32)

    @pl.when(pl.program_id(2) == pl.num_programs(2) - 1)
    def _():
        y = acc_ref[...] + b_ref[...]
        o_ref[...] = jnp.clip(y, 0.0, 6.0).astype(o_ref.dtype)


def _x_map(i, j, k):
    return (i, k)


def _w_map(i, j, k):
    return (k, j)


def _b_map(i, j, k):
    return (0, j)


def _o_map(i, j, k):
    return (i, j)


@functools.lru_cache(maxsize=None)
def _fused_conv_matmul(m, cout, kp, tm, tn, tk):
    grid = (pl.cdiv(m, tm), pl.cdiv(cout, tn), kp // tk)
    np_ = _round_up(cout, tn)
    flops = 2 * m * kp * np_
    bytes_accessed = (m * kp + kp * np_ + m * cout) * 2 + np_ * 4
    return pl.pallas_call(
        _conv_matmul_kernel,
        out_shape=jax.ShapeDtypeStruct((m, cout), jnp.bfloat16),
        grid_spec=pltpu.PrefetchScalarGridSpec(
            num_scalar_prefetch=0,
            grid=grid,
            in_specs=[
                pl.BlockSpec((tm, tk), _x_map),
                pl.BlockSpec((tk, tn), _w_map),
                pl.BlockSpec((1, tn), _b_map),
            ],
            out_specs=pl.BlockSpec((tm, tn), _o_map),
            scratch_shapes=[pltpu.VMEM((tm, tn), jnp.float32)],
        ),
        compiler_params=pltpu.CompilerParams(
            dimension_semantics=("parallel", "parallel", "arbitrary"),
            vmem_limit_bytes=48 * 1024 * 1024),
        cost_estimate=pl.CostEstimate(flops=flops, transcendentals=0,
                                      bytes_accessed=bytes_accessed),
    )


def _maxpool_kernel(w_ref, o_ref):
    # w_ref: (kernel*kernel, TM, C) stacked shifted windows; reduce over taps.
    o_ref[...] = jnp.max(w_ref[...], axis=0)


@functools.lru_cache(maxsize=None)
def _maxpool_call(kk, m, c, tmp):
    grid = (pl.cdiv(m, tmp),)
    return pl.pallas_call(
        _maxpool_kernel,
        out_shape=jax.ShapeDtypeStruct((m, c), jnp.bfloat16),
        grid_spec=pltpu.PrefetchScalarGridSpec(
            num_scalar_prefetch=0,
            grid=grid,
            in_specs=[pl.BlockSpec((kk, tmp, c), lambda i: (0, i, 0))],
            out_specs=pl.BlockSpec((tmp, c), lambda i: (i, 0)),
        ),
        compiler_params=pltpu.CompilerParams(
            dimension_semantics=("parallel",),
            vmem_limit_bytes=48 * 1024 * 1024),
    )


# ------------------------------- op wrappers ---------------------------------

def conv_bn_relu6(parts, p):
    """Conv2d(bias=False)+BN(eval, folded)+ReLU6 on a list of channel-parts (NHWC bf16)."""
    kernel, stride = p["kernel"], p["stride"]
    k, kp = p["k"], p["kp"]
    n, h, wd = parts[0].shape[:3]

    pad = kernel // 2
    if pad:
        padded = [jnp.pad(pt, ((0, 0), (pad, pad), (pad, pad), (0, 0)))
                  for pt in parts]
    else:
        padded = list(parts)
    hp, wp = padded[0].shape[1], padded[0].shape[2]
    ho = (hp - kernel) // stride + 1
    wo = (wp - kernel) // stride + 1

    # im2col: one concatenate fuses the (dh, dw) taps, the HarDBlock link concat
    # (channel-part ordering matches torch.cat) and the zero K-padding.
    cols = []
    for dh in range(kernel):
        for dw in range(kernel):
            for xp in padded:
                cols.append(xp[:, dh:dh + stride * (ho - 1) + 1:stride,
                               dw:dw + stride * (wo - 1) + 1:stride, :])
    if kp > k:
        cols.append(jnp.zeros((n, ho, wo, kp - k), jnp.bfloat16))
    patches = cols[0] if len(cols) == 1 else jnp.concatenate(cols, axis=-1)

    m = n * ho * wo
    patches = patches.reshape(m, kp)
    tm = _pick_m_tile(m)
    out = _fused_conv_matmul(m, p["cout"], kp, tm, p["tn"], p["tk"])(
        patches, p["w"], p["bias"])
    return out.reshape(n, ho, wo, p["cout"])


def maxpool(x, kernel, stride, pad):
    n, h, w, c = x.shape
    if pad:
        x = jnp.pad(x, ((0, 0), (pad, pad), (pad, pad), (0, 0)),
                    constant_values=-jnp.inf)
    hp, wp = x.shape[1], x.shape[2]
    ho = (hp - kernel) // stride + 1
    wo = (wp - kernel) // stride + 1
    wins = []
    for dh in range(kernel):
        for dw in range(kernel):
            wins.append(x[:, dh:dh + stride * (ho - 1) + 1:stride,
                          dw:dw + stride * (wo - 1) + 1:stride, :])
    wins = jnp.stack(wins, axis=0).reshape(kernel * kernel, n * ho * wo, c)
    m = n * ho * wo
    tmp = _pick_m_tile(m)
    out = _maxpool_call(kernel * kernel, m, c, tmp)(wins)
    return out.reshape(n, ho, wo, c)


# --------------------------- parameter construction --------------------------

def _init_conv(key, cin, cout, kernel=3, stride=1):
    kw_, kb, kg = jax.random.split(key, 3)
    fan_in = cin * kernel * kernel
    w = jax.random.normal(kw_, (cout, cin, kernel, kernel),
                          jnp.float32) * (2.0 / fan_in) ** 0.5
    # PyTorch conv weight (Cout, Cin, KH, KW) -> matmul matrix (KH*KW*Cin, Cout),
    # matching the im2col patch ordering above.
    w_mat = jnp.transpose(w, (2, 3, 1, 0)).reshape(kernel * kernel * cin, cout)
    # BatchNorm2d eval-mode: fold (gamma, beta, running_mean=0, running_var=1).
    gamma = 1.0 + 0.1 * jax.random.normal(kg, (cout,), jnp.float32)
    beta = 0.1 * jax.random.normal(kb, (cout,), jnp.float32)
    rmean = jnp.zeros((cout,), jnp.float32)
    rvar = jnp.ones((cout,), jnp.float32)
    eps = 1e-5
    scale = gamma / jnp.sqrt(rvar + eps)
    bias = beta - rmean * scale
    # Fold BN scale directly into the weight columns.
    w_mat = w_mat * scale[None, :]

    k = kernel * kernel * cin
    kp, tk = _pick_k_tile(k)
    tn = _pick_n_tile(cout)
    np_ = _round_up(cout, tn)
    w_pad = jnp.zeros((kp, np_), jnp.float32).at[:k, :cout].set(w_mat)
    w_pad = w_pad.astype(jnp.bfloat16)
    b_pad = jnp.zeros((1, np_), jnp.float32).at[0, :cout].set(bias)
    return dict(w=w_pad, bias=b_pad, kernel=kernel, stride=stride,
                cin=cin, cout=cout, k=k, kp=kp, tk=tk, tn=tn)


def get_link(layer, base_ch, growth_rate, grmul):
    if layer == 0:
        return base_ch, 0, []
    out_channels = growth_rate
    link = []
    for i in range(10):
        dv = 2 ** i
        if layer % dv == 0:
            k = layer - dv
            link.append(k)
            if i > 0:
                out_channels *= grmul
    out_channels = int(int(out_channels + 1) / 2) * 2
    in_channels = 0
    for i in link:
        ch, _, _ = get_link(i, base_ch, growth_rate, grmul)
        in_channels += ch
    return out_channels, in_channels, link


def build_hardblock(key, in_channels, growth_rate, grmul, n_layers):
    links, layers = [], []
    out_channels = 0
    for i in range(n_layers):
        outch, inch, link = get_link(i + 1, in_channels, growth_rate, grmul)
        links.append(link)
        key, sub = jax.random.split(key)
        layers.append(_init_conv(sub, inch, outch, kernel=3, stride=1))
        if i % 2 == 0 or i == n_layers - 1:
            out_channels += outch
    blk = dict(links=links, layers=layers, out_channels=out_channels,
               keep_base=False)
    return blk, key


def hardblock_forward(blk, x_parts):
    # Activations are lists of NHWC channel-parts; the link concat is folded into
    # each conv's im2col concatenate instead of being materialized separately.
    layers_ = [list(x_parts)]
    for link, p in zip(blk["links"], blk["layers"]):
        tin_parts = []
        for i in link:
            tin_parts.extend(layers_[i])
        layers_.append([conv_bn_relu6(tin_parts, p)])
    t = len(layers_)
    out_parts = []
    for i in range(t):
        if (i == 0 and blk["keep_base"]) or i == t - 1 or i % 2 == 1:
            out_parts.extend(layers_[i])
    return out_parts


def build_hardnet(key, arch=39, depth_wise=False):
    first_ch = [32, 64]
    second_kernel = 3
    grmul = 1.7
    ch_list = [128, 256, 320, 640, 1024]
    gr = [14, 16, 20, 40, 160]
    n_layers = [8, 16, 16, 16, 4]
    down_samp = [1, 0, 1, 1, 0]
    if arch == 85:
        first_ch = [48, 96]
        ch_list = [192, 256, 320, 480, 720, 1280]
        gr = [24, 24, 28, 36, 48, 256]
        n_layers = [8, 16, 16, 16, 16, 4]
        down_samp = [1, 0, 1, 0, 1, 0]
    elif arch == 39:
        first_ch = [24, 48]
        ch_list = [96, 320, 640, 1024]
        grmul = 1.6
        gr = [16, 20, 64, 160]
        n_layers = [4, 16, 8, 4]
        down_samp = [1, 1, 1, 0]
    assert not depth_wise  # TODO(synk): depth_wise (CombConv/DWConv) not implemented.

    blks = len(n_layers)
    base = []
    key, k0 = jax.random.split(key)
    base.append(("conv", _init_conv(k0, 3, first_ch[0], kernel=3, stride=2)))
    key, k1 = jax.random.split(key)
    base.append(("conv", _init_conv(k1, first_ch[0], first_ch[1],
                                    kernel=second_kernel, stride=1)))
    base.append(("maxpool", dict(kernel=3, stride=2, pad=1)))
    ch = first_ch[1]
    for i in range(blks):
        blk, key = build_hardblock(key, ch, gr[i], grmul, n_layers[i])
        ch = blk["out_channels"]
        base.append(("hardblock", blk))
        if i == blks - 1 and arch == 85:
            base.append(("dropout", None))  # eval-mode identity
        key, kc = jax.random.split(key)
        base.append(("conv", _init_conv(kc, ch, ch_list[i], kernel=1, stride=1)))
        ch = ch_list[i]
        if down_samp[i] == 1:
            base.append(("maxpool", dict(kernel=2, stride=2, pad=0)))
    # The classifier head (AdaptiveAvgPool2d/Flatten/Dropout/Linear) is never run
    # by the PyTorch forward() (it loops range(len(base)-1)), so it is not built.
    return base


def hardnet_forward(base, x_nchw):
    x = jnp.transpose(x_nchw, (0, 2, 3, 1)).astype(jnp.bfloat16)  # NCHW -> NHWC bf16
    parts = [x]
    out_branch = [x_nchw]
    for i, (kind, p) in enumerate(base):
        if kind == "conv":
            parts = [conv_bn_relu6(parts, p)]
        elif kind == "maxpool":
            parts = [maxpool(pt, p["kernel"], p["stride"], p["pad"])
                     for pt in parts]
        elif kind == "hardblock":
            parts = hardblock_forward(p, parts)
        elif kind == "dropout":
            pass  # nn.Dropout is identity in eval mode
        if i in (1, 4, 9, 12, 15):
            full = parts[0] if len(parts) == 1 else jnp.concatenate(parts, axis=-1)
            out_branch.append(
                jnp.transpose(full, (0, 3, 1, 2)).astype(jnp.float32))  # back to NCHW f32
    return out_branch


if __name__ == "__main__":
    key = jax.random.PRNGKey(0)
    kparam, kx = jax.random.split(key)
    # Small, runnable configuration: HarDNet(arch=39, depth_wise=False),
    # input batch=2, 3x64x64 (same forward semantics as the torch module).
    base = build_hardnet(kparam, arch=39, depth_wise=False)
    x = jax.random.normal(kx, (2, 3, 64, 64), jnp.float32)
    outs = hardnet_forward(base, x)
    for o in outs:
        jax.block_until_ready(o)
    print("KERNEL_OK")
</pallas_src>

<mosaic_0001>
module attributes {stable_mosaic.version = 11 : i64} {
  func.func @_conv_matmul_kernel(%arg0: i32, %arg1: i32, %arg2: i32, %arg3: memref<512x32xbf16, #tpu.memory_space<vmem>>, %arg4: memref<32x128xbf16, #tpu.memory_space<vmem>>, %arg5: memref<1x128xf32, #tpu.memory_space<vmem>>, %arg6: memref<512x128xbf16, #tpu.memory_space<vmem>>, %arg7: memref<512x128xf32, #tpu.memory_space<vmem>>) attributes {dimension_semantics = [#tpu.dimension_semantics<parallel>, #tpu.dimension_semantics<parallel>, #tpu.dimension_semantics<arbitrary>], iteration_bounds = array<i64: 4, 1, 1>, scalar_prefetch = 0 : i64, scratch_operands = 1 : i64, tpu.core_type = #tpu.core_type<tc>, window_params = [{transform_indices = @transform_0, window_bounds = array<i64: 512, 32>}, {transform_indices = @transform_1, window_bounds = array<i64: 32, 128>}, {transform_indices = @transform_2, window_bounds = array<i64: 1, 128>}, {transform_indices = @transform_3, window_bounds = array<i64: 512, 128>}]} {
    %c0_i32 = arith.constant 0 : i32
    %0 = arith.cmpi eq, %arg2, %c0_i32 : i32
    %1 = arith.extui %0 : i1 to i32
    %c0_i32_0 = arith.constant 0 : i32
    %2 = arith.cmpi ne, %1, %c0_i32_0 : i32
    scf.if %2 {
      %cst_10 = arith.constant 0.000000e+00 : f32
      %12 = vector.broadcast %cst_10 : f32 to vector<512x128xf32>
      %c0_11 = arith.constant 0 : index
      %c0_12 = arith.constant 0 : index
      %13 = vector.load %arg7[%c0_11, %c0_12] : memref<512x128xf32, #tpu.memory_space<vmem>>, vector<512x128xf32>
      tpu.vector_store %arg7[%c0_11, %c0_12], %12 {strides = array<i32>} : memref<512x128xf32, #tpu.memory_space<vmem>>, vector<512x128xf32>,
    } else {
    }
    %c0 = arith.constant 0 : index
    %c0_1 = arith.constant 0 : index
    %3 = vector.load %arg7[%c0, %c0_1] : memref<512x128xf32, #tpu.memory_space<vmem>>, vector<512x128xf32>
    %c0_2 = arith.constant 0 : index
    %c0_3 = arith.constant 0 : index
    %4 = vector.load %arg3[%c0_2, %c0_3] : memref<512x32xbf16, #tpu.memory_space<vmem>>, vector<512x32xbf16>
    %c0_4 = arith.constant 0 : index
    %c0_5 = arith.constant 0 : index
    %5 = vector.load %arg4[%c0_4, %c0_5] : memref<32x128xbf16, #tpu.memory_space<vmem>>, vector<32x128xbf16>
    %cst = arith.constant dense<0.000000e+00> : vector<512x128xf32>
    %6 = tpu.matmul %4, %5, %cst {dimension_numbers = #tpu.dot_dimension_numbers<[1], [0], [0], [1], [0, 0, 1, 1], [], []>} : vector<512x32xbf16>, vector<32x128xbf16>, vector<512x128xf32> -> vector<512x128xf32>
    %7 = arith.addf %3, %6 : vector<512x128xf32>
    %c0_6 = arith.constant 0 : index
    %c0_7 = arith.constant 0 : index
    %8 = vector.load %arg7[%c0_6, %c0_7] : memref<512x128xf32, #tpu.memory_space<vmem>>, vector<512x128xf32>
    tpu.vector_store %arg7[%c0_6, %c0_7], %7 {strides = array<i32>} : memref<512x128xf32, #tpu.memory_space<vmem>>, vector<512x128xf32>,
    %c0_i32_8 = arith.constant 0 : i32
    %9 = arith.cmpi eq, %arg2, %c0_i32_8 : i32
    %10 = arith.extui %9 : i1 to i32
    %c0_i32_9 = arith.constant 0 : i32
    %11 = arith.cmpi ne, %10, %c0_i32_9 : i32
    scf.if %11 {
      %c0_10 = arith.constant 0 : index
      %c0_11 = arith.constant 0 : index
      %12 = vector.load %arg7[%c0_10, %c0_11] : memref<512x128xf32, #tpu.memory_space<vmem>>, vector<512x128xf32>
      %c0_12 = arith.constant 0 : index
      %c0_13 = arith.constant 0 : index
      %13 = vector.load %arg5[%c0_12, %c0_13] : memref<1x128xf32, #tpu.memory_space<vmem>>, vector<1x128xf32>
      %14 = vector.broadcast %13 : vector<1x128xf32> to vector<512x128xf32>
      %15 = arith.addf %12, %14 : vector<512x128xf32>
      %cst_14 = arith.constant 0.000000e+00 : f32
      %cst_15 = arith.constant 6.000000e+00 : f32
      %16 = vector.broadcast %cst_14 : f32 to vector<512x128xf32>
      %17 = arith.maximumf %16, %15 : vector<512x128xf32>
      %18 = vector.broadcast %cst_15 : f32 to vector<512x128xf32>
      %19 = arith.minimumf %18, %17 : vector<512x128xf32>
      %20 = arith.truncf %19 : vector<512x128xf32> to vector<512x128xbf16>
      %c0_16 = arith.constant 0 : index
      %c0_17 = arith.constant 0 : index
      %21 = vector.load %arg6[%c0_16, %c0_17] : memref<512x128xbf16, #tpu.memory_space<vmem>>, vector<512x128xbf16>
      tpu.vector_store %arg6[%c0_16, %c0_17], %20 {strides = array<i32>} : memref<512x128xbf16, #tpu.memory_space<vmem>>, vector<512x128xbf16>,
    } else {
    }
    return
  }
  func.func @transform_0(%arg0: i32, %arg1: i32, %arg2: i32) -> (i32, i32) {
    %c0_i32 = arith.constant 0 : i32
    return %arg0, %arg2 : i32, i32
  }
  func.func @transform_1(%arg0: i32, %arg1: i32, %arg2: i32) -> (i32, i32) {
    %c0_i32 = arith.constant 0 : i32
    return %arg2, %arg1 : i32, i32
  }
  func.func @transform_2(%arg0: i32, %arg1: i32, %arg2: i32) -> (i32, i32) {
    %c0_i32 = arith.constant 0 : i32
    %c0_i32_0 = arith.constant 0 : i32
    return %c0_i32, %arg1 : i32, i32
  }
  func.func @transform_3(%arg0: i32, %arg1: i32, %arg2: i32) -> (i32, i32) {
    %c0_i32 = arith.constant 0 : i32
    return %arg0, %arg1 : i32, i32
  }
}

</mosaic_0001>

<bundles_post_ra>
// kernel: tpu_custom_call.1
= control target key start
LH: loop header
LB: loop body
LE: loop exit
PB: predicated region body
PF: predicated region fallthrough
CT: control target
= control target key end

     0   :  { %s2450_s12 = smov 0   ;;  %s2452_s13 = smov 0   ;;  %s2665_s0 = inlined_call_operand.vmem [shape: bf16[2048,32], index: 0, kind: input, shape index: {}]   ;;  %s2666_s1 = inlined_call_operand.vmem [shape: bf16[32,128], index: 1, kind: input, shape index: {}]   ;;  %s2667_s2 = inlined_call_operand.vmem [shape: f32[1,128], index: 2, kind: input, shape index: {}]   ;;  %s2668_s3 = inlined_call_operand.vmem [shape: bf16[2048,24], index: 3, kind: output, shape index: {}]  }
   0x1   :  { %s2454_s14 = smov 0  }
   0x2 LB: > { %s32_s15 = sadd.s32 1, %s2424_s13  ;;  %p1849_p0 = scmp.ge.s32.totalorder %s2428_s14, 1  ;;  %s2428_s14 = sphi %s2454_s14, %s13_s14   ;;  %s2424_s13 = sphi %s2452_s13, %s2670_s13   ;;  %s2420_s12 = sphi %s2450_s12, %s2669_s12  }
   0x3   : > { %p34_p1 = scmp.ge.s32.totalorder %s32_s15, 4  ;;  %p188_p2 = scmp.lt.s32.totalorder %s2428_s14, 5 }
   0x5   : > { %s2672_s15 = smov (%p34_p1, %s32_s15), 0  ;;  %p189_p3 = pnand %p1849_p0, %p188_p2 }
   0x6   : > { %s1850_s18 = sshll.u32 (!%p189_p3), %s2420_s12, 6 }
   0x7   : > { %192 = sbr.rel (%p189_p3) target bundleno = 285 (0x11d), region = 32  ;;  %p230_p4 = scmp.lt.s32.totalorder (!%p189_p3), %s1850_s18, 255 }
   0xc   : > { %v2372_v0 = vld [vmem:[%s2666_s1 + $0x8] sm:$0xff]   ;;  %v2373_v1 = vld [vmem:[%s2666_s1] sm:$0xff]   ;;  %s2674_s18 = smov (!%p230_p4, %s1850_s18), 255  ;;  %vm632_vm0 = vcmask 261120  }
   0xd   : > { %2276 = vmatprep.subr.bf16.mxu0 %v2372_v0  ;;  %2344 = vmatprep.subr.bf16.mxu1 %v2372_v0  ;;  %s1851_s21 = sshll.u32 %s2674_s18, 2  ;;  %v2551_v34 = vld [vmem:[%s2667_s2] ss:$0 sm:$0xff] }
   0xe   : > { %2277 = vmatpush3.bf16.msra.mxu0 %v2372_v0  ;;  %2346 = vmatpush3.bf16.msra.mxu1 %v2372_v0  ;;  %s2482_s24 = scalar_lea.vmem %s2665_s0, %s1851_s21  ;;  %s2567_s29 = scalar_lea.vmem %s2668_s3, %s1851_s21 }
   0xf   : > { %2278 = vmatprep.subr.bf16.mxu0 %v2373_v1  ;;  %2345 = vmatprep.subr.bf16.mxu1 %v2373_v1  ;;  %v2374_v2 = vld [vmem:[%s2482_s24] sm:$0xff]   ;;  %v2376_v4 = vld [vmem:[%s2482_s24 + $0x8] sm:$0xff]   ;;  %v2378_v6 = vld [vmem:[%s2482_s24 + $0x10] sm:$0xff]  }
  0x10   : > { %v2375_v3 = vld [vmem:[%s2482_s24 + $0x80] sm:$0xff]   ;;  %2280 = vmatprep.mubr.msk.bf16.mxu0 %vm632_vm0, %v2374_v2  ;;  %v2377_v5 = vld [vmem:[%s2482_s24 + $0x88] sm:$0xff]   ;;  %v2379_v7 = vld [vmem:[%s2482_s24 + $0x90] sm:$0xff]  }
  0x11   : > { %2312 = vmatprep.mubr.msk.bf16.mxu1 %vm632_vm0, %v2375_v3  ;;  %v2380_v8 = vld [vmem:[%s2482_s24 + $0x18] sm:$0xff]   ;;  %v2382_v10 = vld [vmem:[%s2482_s24 + $0x20] sm:$0xff]   ;;  %v2384_v12 = vld [vmem:[%s2482_s24 + $0x28] sm:$0xff]  }
  0x12   : > { %2279 = vmatpush3.bf16.msra.mxu0 %v2373_v1  ;;  %2347 = vmatpush3.bf16.msra.mxu1 %v2373_v1  ;;  %v2381_v9 = vld [vmem:[%s2482_s24 + $0x98] sm:$0xff]   ;;  %v2383_v11 = vld [vmem:[%s2482_s24 + $0xa0] sm:$0xff]   ;;  %v2385_v13 = vld [vmem:[%s2482_s24 + $0xa8] sm:$0xff]  }
  0x13   : > { %v2386_v14 = vld [vmem:[%s2482_s24 + $0x30] sm:$0xff]   ;;  %v2388_v16 = vld [vmem:[%s2482_s24 + $0x38] sm:$0xff]   ;;  %v2390_v18 = vld [vmem:[%s2482_s24 + $0x40] sm:$0xff]  }
  0x14   : > { %v2387_v15 = vld [vmem:[%s2482_s24 + $0xb0] sm:$0xff]   ;;  %v2389_v17 = vld [vmem:[%s2482_s24 + $0xb8] sm:$0xff]   ;;  %v2391_v19 = vld [vmem:[%s2482_s24 + $0xc0] sm:$0xff]  }
  0x15   : > { %2281 = vmatmul.mubr.msk.bf16.vlgmr.msra.gmra.mxu0 %vm632_vm0, %v2376_v4  ;;  %2313 = vmatmul.mubr.msk.bf16.vlgmr.msra.gmra.mxu1 %vm632_vm0, %v2377_v5  ;;  %v2392_v20 = vld [vmem:[%s2482_s24 + $0x48] sm:$0xff]   ;;  %v2394_v22 = vld [vmem:[%s2482_s24 + $0x50] sm:$0xff]   ;;  %v2396_v24 = vld [vmem:[%s2482_s24 + $0x58] sm:$0xff]  }
  0x16   : > { %2284 = vmatprep.mubr.msk.bf16.mxu0 %vm632_vm0, %v2378_v6  ;;  %2316 = vmatprep.mubr.msk.bf16.mxu1 %vm632_vm0, %v2379_v7  ;;  %v2393_v21 = vld [vmem:[%s2482_s24 + $0xc8] sm:$0xff]   ;;  %v2395_v23 = vld [vmem:[%s2482_s24 + $0xd0] sm:$0xff]   ;;  %v2397_v25 = vld [vmem:[%s2482_s24 + $0xd8] sm:$0xff]  }
  0x17   : > { %v2398_v26 = vld [vmem:[%s2482_s24 + $0x60] sm:$0xff]   ;;  %v2400_v28 = vld [vmem:[%s2482_s24 + $0x68] sm:$0xff]   ;;  %v2402_v30 = vld [vmem:[%s2482_s24 + $0x70] sm:$0xff]  }
  0x18   : > { %v2399_v27 = vld [vmem:[%s2482_s24 + $0xe0] sm:$0xff]   ;;  %v2401_v29 = vld [vmem:[%s2482_s24 + $0xe8] sm:$0xff]   ;;  %v2403_v31 = vld [vmem:[%s2482_s24 + $0xf0] sm:$0xff]  }
  0x19   : > { %v2404_v32 = vld [vmem:[%s2482_s24 + $0x78] sm:$0xff]  }
  0x1a   : > { %v2405_v33 = vld [vmem:[%s2482_s24 + $0xf8] sm:$0xff]  }
  0x1d   : > { %2285 = vmatmul.mubr.msk.bf16.gmra.mxu0 %vm632_vm0, %v2380_v8  ;;  %2317 = vmatmul.mubr.msk.bf16.gmra.mxu1 %vm632_vm0, %v2381_v9 }
  0x1e   : > { %2288 = vmatprep.mubr.msk.bf16.mxu0 %vm632_vm0, %v2382_v10  ;;  %2320 = vmatprep.mubr.msk.bf16.mxu1 %vm632_vm0, %v2383_v11 }
  0x25   : > { %2289 = vmatmul.mubr.msk.bf16.gmra.mxu0 %vm632_vm0, %v2384_v12  ;;  %2321 = vmatmul.mubr.msk.bf16.gmra.mxu1 %vm632_vm0, %v2385_v13 }
  0x26   : > { %2292 = vmatprep.mubr.msk.bf16.mxu0 %vm632_vm0, %v2386_v14  ;;  %2324 = vmatprep.mubr.msk.bf16.mxu1 %vm632_vm0, %v2387_v15 }
  0x2d   : > { %2293 = vmatmul.mubr.msk.bf16.gmra.mxu0 %vm632_vm0, %v2388_v16  ;;  %2325 = vmatmul.mubr.msk.bf16.gmra.mxu1 %vm632_vm0, %v2389_v17 }
  0x2e   : > { %2296 = vmatprep.mubr.msk.bf16.mxu0 %vm632_vm0, %v2390_v18  ;;  %2328 = vmatprep.mubr.msk.bf16.mxu1 %vm632_vm0, %v2391_v19 }
  0x35   : > { %2297 = vmatmul.mubr.msk.bf16.gmra.mxu0 %vm632_vm0, %v2392_v20  ;;  %2329 = vmatmul.mubr.msk.bf16.gmra.mxu1 %vm632_vm0, %v2393_v21 }
  0x36   : > { %2300 = vmatprep.mubr.msk.bf16.mxu0 %vm632_vm0, %v2394_v22  ;;  %2332 = vmatprep.mubr.msk.bf16.mxu1 %vm632_vm0, %v2395_v23 }
  0x3d   : > { %2301 = vmatmul.mubr.msk.bf16.gmra.mxu0 %vm632_vm0, %v2396_v24  ;;  %2333 = vmatmul.mubr.msk.bf16.gmra.mxu1 %vm632_vm0, %v2397_v25 }
  0x3e   : > { %2304 = vmatprep.mubr.msk.bf16.mxu0 %vm632_vm0, %v2398_v26  ;;  %2336 = vmatprep.mubr.msk.bf16.mxu1 %vm632_vm0, %v2399_v27 }
  0x45   : > { %2305 = vmatmul.mubr.msk.bf16.gmra.mxu0 %vm632_vm0, %v2400_v28  ;;  %2337 = vmatmul.mubr.msk.bf16.gmra.mxu1 %vm632_vm0, %v2401_v29 }
  0x46   : > { %2308 = vmatprep.mubr.msk.bf16.mxu0 %vm632_vm0, %v2402_v30  ;;  %2340 = vmatprep.mubr.msk.bf16.mxu1 %vm632_vm0, %v2403_v31 }
  0x4d   : > { %2309 = vmatmul.mubr.msk.bf16.gmra.mxu0 %vm632_vm0, %v2404_v32  ;;  %2341 = vmatmul.mubr.msk.bf16.gmra.mxu1 %vm632_vm0, %v2405_v33 }
  0xd5   : > { %v2282_v35 = vpop.f32.mrf.mxu0  ;;  %v2314_v37 = vpop.f32.mrf.mxu1 }
  0xd6   : > { %v1222_v36 = vadd.f32 %v2282_v35, %v2551_v34  ;;  %v1254_v38 = vadd.f32 %v2314_v37, %v2551_v34 }
  0xd7   : > { %v763_v39 = vpop.f32.mrf.mxu0  ;;  %v891_v41 = vpop.f32.mrf.mxu1 }
  0xd8   : > { %v1220_v40 = vadd.f32 %v2551_v34, %v763_v39  ;;  %v1252_v42 = vadd.f32 %v2551_v34, %v891_v41  ;;  %v1286_v44 = vmax.f32 %v1222_v36, 0.0  ;;  %v1318_v47 = vmax.f32 %v1254_v38, 0.0 }
  0xd9   : > { %v2283_v43 = vpop.f32.mrf.mxu0  ;;  %v2315_v46 = vpop.f32.mrf.mxu1 }
  0xda   : > { %v1223_v45 = vadd.f32 %v2283_v43, %v2551_v34  ;;  %v1255_v48 = vadd.f32 %v2315_v46, %v2551_v34  ;;  %v1284_v50 = vmax.f32 %v1220_v40, 0.0  ;;  %v1316_v54 = vmax.f32 %v1252_v42, 0.0 }
  0xdb   : > { %v766_v49 = vpop.f32.mrf.mxu0  ;;  %v894_v53 = vpop.f32.mrf.mxu1  ;;  %v1350_v58 = vmin.f32 %v1286_v44, 6.0  ;;  %v1382_v63 = vmin.f32 %v1318_v47, 6.0 }
  0xdc   : > { %v1287_v51 = vmax.f32 %v1223_v45, 0.0  ;;  %v1221_v52 = vadd.f32 %v2551_v34, %v766_v49  ;;  %v1319_v55 = vmax.f32 %v1255_v48, 0.0  ;;  %v1253_v56 = vadd.f32 %v2551_v34, %v894_v53 }
  0xdd   : > { %v2286_v57 = vpop.f32.mrf.mxu0  ;;  %v2318_v62 = vpop.f32.mrf.mxu1  ;;  %v1348_v4 = vmin.f32 %v1284_v50, 6.0  ;;  %v1380_v9 = vmin.f32 %v1316_v54, 6.0 }
  0xde   : > { %v1351_v59 = vmin.f32 %v1287_v51, 6.0  ;;  %v1285_v60 = vmax.f32 %v1221_v52, 0.0  ;;  %v1226_v61 = vadd.f32 %v2286_v57, %v2551_v34  ;;  %v1383_v0 = vmin.f32 %v1319_v55, 6.0 }
  0xdf   : > { %v1317_v1 = vmax.f32 %v1253_v56, 0.0  ;;  %v1258_v2 = vadd.f32 %v2318_v62, %v2551_v34  ;;  %v779_v3 = vpop.f32.mrf.mxu0  ;;  %v907_v8 = vpop.f32.mrf.mxu1 }
  0xe0   : > { %v2059_v5 = vpack.c.bf16 %v1351_v59, %v1350_v58  ;;  %v1349_v6 = vmin.f32 %v1285_v60, 6.0  ;;  %v1224_v7 = vadd.f32 %v2551_v34, %v779_v3  ;;  %v2139_v10 = vpack.c.bf16 %v1383_v0, %v1382_v63 }
  0xe1   : > { %v1381_v11 = vmin.f32 %v1317_v1, 6.0  ;;  %v1256_v12 = vadd.f32 %v2551_v34, %v907_v8  ;;  %v2287_v13 = vpop.f32.mrf.mxu0  ;;  %v1290_v15 = vmax.f32 %v1226_v61, 0.0  ;;  %v2319_v17 = vpop.f32.mrf.mxu1  ;;  %v1322_v19 = vmax.f32 %v1258_v2, 0.0 }
  0xe2   : > { %2211 = vst [vmem:[%s2567_s29 + $0x8] sm:$0xff] %v2059_v5   ;;  %v2054_v14 = vpack.c.bf16 %v1349_v6, %v1348_v4  ;;  %v1227_v16 = vadd.f32 %v2287_v13, %v2551_v34  ;;  %2227 = vst [vmem:[%s2567_s29 + $0x88] sm:$0xff] %v2139_v10   ;;  %v1259_v20 = vadd.f32 %v2319_v17, %v2551_v34  ;;  %v1288_v22 = vmax.f32 %v1224_v7, 0.0 }
  0xe3   : > { %v2134_v18 = vpack.c.bf16 %v1381_v11, %v1380_v9  ;;  %v782_v21 = vpop.f32.mrf.mxu0  ;;  %v910_v25 = vpop.f32.mrf.mxu1  ;;  %v1320_v26 = vmax.f32 %v1256_v12, 0.0  ;;  %v1354_v30 = vmin.f32 %v1290_v15, 6.0  ;;  %v1386_v36 = vmin.f32 %v1322_v19, 6.0 }
  0xe4   : > { %2055 = vst [vmem:[%s2567_s29] sm:$0xff] %v2054_v14   ;;  %v1291_v23 = vmax.f32 %v1227_v16, 0.0  ;;  %v1225_v24 = vadd.f32 %v2551_v34, %v782_v21  ;;  %v1323_v27 = vmax.f32 %v1259_v20, 0.0  ;;  %v1257_v28 = vadd.f32 %v2551_v34, %v910_v25 }
  0xe5   : > { %2226 = vst [vmem:[%s2567_s29 + $0x80] sm:$0xff] %v2134_v18   ;;  %v2290_v29 = vpop.f32.mrf.mxu0  ;;  %v2322_v35 = vpop.f32.mrf.mxu1  ;;  %v1352_v41 = vmin.f32 %v1288_v22, 6.0  ;;  %v1384_v46 = vmin.f32 %v1320_v26, 6.0 }
  0xe6   : > { %v1355_v31 = vmin.f32 %v1291_v23, 6.0  ;;  %v1289_v32 = vmax.f32 %v1225_v24, 0.0  ;;  %v1230_v33 = vadd.f32 %v2290_v29, %v2551_v34  ;;  %v1387_v37 = vmin.f32 %v1323_v27, 6.0 }
  0xe7   : > { %v1321_v38 = vmax.f32 %v1257_v28, 0.0  ;;  %v1262_v39 = vadd.f32 %v2322_v35, %v2551_v34  ;;  %v795_v40 = vpop.f32.mrf.mxu0  ;;  %v923_v45 = vpop.f32.mrf.mxu1 }
  0xe8   : > { %v2069_v42 = vpack.c.bf16 %v1355_v31, %v1354_v30  ;;  %v1353_v43 = vmin.f32 %v1289_v32, 6.0  ;;  %v1228_v44 = vadd.f32 %v2551_v34, %v795_v40  ;;  %v2149_v47 = vpack.c.bf16 %v1387_v37, %v1386_v36 }
  0xe9   : > { %v1385_v48 = vmin.f32 %v1321_v38, 6.0  ;;  %v1260_v49 = vadd.f32 %v2551_v34, %v923_v45  ;;  %v2291_v50 = vpop.f32.mrf.mxu0  ;;  %v1294_v52 = vmax.f32 %v1230_v33, 0.0  ;;  %v2323_v54 = vpop.f32.mrf.mxu1  ;;  %v1326_v56 = vmax.f32 %v1262_v39, 0.0 }
  0xea   : > { %2213 = vst [vmem:[%s2567_s29 + $0x18] sm:$0xff] %v2069_v42   ;;  %v2064_v51 = vpack.c.bf16 %v1353_v43, %v1352_v41  ;;  %v1231_v53 = vadd.f32 %v2291_v50, %v2551_v34  ;;  %2229 = vst [vmem:[%s2567_s29 + $0x98] sm:$0xff] %v2149_v47   ;;  %v1263_v57 = vadd.f32 %v2323_v54, %v2551_v34  ;;  %v1292_v59 = vmax.f32 %v1228_v44, 0.0 }
  0xeb   : > { %v2144_v55 = vpack.c.bf16 %v1385_v48, %v1384_v46  ;;  %v798_v58 = vpop.f32.mrf.mxu0  ;;  %v926_v62 = vpop.f32.mrf.mxu1  ;;  %v1324_v63 = vmax.f32 %v1260_v49, 0.0  ;;  %v1358_v3 = vmin.f32 %v1294_v52, 6.0  ;;  %v1390_v8 = vmin.f32 %v1326_v56, 6.0 }
  0xec   : > { %2212 = vst [vmem:[%s2567_s29 + $0x10] sm:$0xff] %v2064_v51   ;;  %v1295_v60 = vmax.f32 %v1231_v53, 0.0  ;;  %v1229_v61 = vadd.f32 %v2551_v34, %v798_v58  ;;  %v1327_v0 = vmax.f32 %v1263_v57, 0.0  ;;  %v1261_v1 = vadd.f32 %v2551_v34, %v926_v62 }
  0xed   : > { %2228 = vst [vmem:[%s2567_s29 + $0x90] sm:$0xff] %v2144_v55   ;;  %v2294_v2 = vpop.f32.mrf.mxu0  ;;  %v2326_v7 = vpop.f32.mrf.mxu1  ;;  %v1356_v13 = vmin.f32 %v1292_v59, 6.0  ;;  %v1388_v18 = vmin.f32 %v1324_v63, 6.0 }
  0xee   : > { %v1359_v4 = vmin.f32 %v1295_v60, 6.0  ;;  %v1293_v5 = vmax.f32 %v1229_v61, 0.0  ;;  %v1234_v6 = vadd.f32 %v2294_v2, %v2551_v34  ;;  %v1391_v9 = vmin.f32 %v1327_v0, 6.0 }
  0xef   : > { %v1325_v10 = vmax.f32 %v1261_v1, 0.0  ;;  %v1266_v11 = vadd.f32 %v2326_v7, %v2551_v34  ;;  %v811_v12 = vpop.f32.mrf.mxu0  ;;  %v939_v17 = vpop.f32.mrf.mxu1 }
  0xf0   : > { %v2079_v14 = vpack.c.bf16 %v1359_v4, %v1358_v3  ;;  %v1357_v15 = vmin.f32 %v1293_v5, 6.0  ;;  %v1232_v16 = vadd.f32 %v2551_v34, %v811_v12  ;;  %v2159_v19 = vpack.c.bf16 %v1391_v9, %v1390_v8 }
  0xf1   : > { %v1389_v20 = vmin.f32 %v1325_v10, 6.0  ;;  %v1264_v21 = vadd.f32 %v2551_v34, %v939_v17  ;;  %v2295_v22 = vpop.f32.mrf.mxu0  ;;  %v1298_v24 = vmax.f32 %v1234_v6, 0.0  ;;  %v2327_v26 = vpop.f32.mrf.mxu1  ;;  %v1330_v28 = vmax.f32 %v1266_v11, 0.0 }
  0xf2   : > { %2215 = vst [vmem:[%s2567_s29 + $0x28] sm:$0xff] %v2079_v14   ;;  %v2074_v23 = vpack.c.bf16 %v1357_v15, %v1356_v13  ;;  %v1235_v25 = vadd.f32 %v2295_v22, %v2551_v34  ;;  %2231 = vst [vmem:[%s2567_s29 + $0xa8] sm:$0xff] %v2159_v19   ;;  %v1267_v29 = vadd.f32 %v2327_v26, %v2551_v34  ;;  %v1296_v31 = vmax.f32 %v1232_v16, 0.0 }
  0xf3   : > { %v2154_v27 = vpack.c.bf16 %v1389_v20, %v1388_v18  ;;  %v814_v30 = vpop.f32.mrf.mxu0  ;;  %v942_v35 = vpop.f32.mrf.mxu1  ;;  %v1328_v36 = vmax.f32 %v1264_v21, 0.0  ;;  %v1362_v40 = vmin.f32 %v1298_v24, 6.0  ;;  %v1394_v45 = vmin.f32 %v1330_v28, 6.0 }
  0xf4   : > { %2214 = vst [vmem:[%s2567_s29 + $0x20] sm:$0xff] %v2074_v23   ;;  %v1299_v32 = vmax.f32 %v1235_v25, 0.0  ;;  %v1233_v33 = vadd.f32 %v2551_v34, %v814_v30  ;;  %v1331_v37 = vmax.f32 %v1267_v29, 0.0  ;;  %v1265_v38 = vadd.f32 %v2551_v34, %v942_v35 }
  0xf5   : > { %2230 = vst [vmem:[%s2567_s29 + $0xa0] sm:$0xff] %v2154_v27   ;;  %v2298_v39 = vpop.f32.mrf.mxu0  ;;  %v2330_v44 = vpop.f32.mrf.mxu1  ;;  %v1360_v50 = vmin.f32 %v1296_v31, 6.0  ;;  %v1392_v55 = vmin.f32 %v1328_v36, 6.0 }
  0xf6   : > { %v1363_v41 = vmin.f32 %v1299_v32, 6.0  ;;  %v1297_v42 = vmax.f32 %v1233_v33, 0.0  ;;  %v1238_v43 = vadd.f32 %v2298_v39, %v2551_v34  ;;  %v1395_v46 = vmin.f32 %v1331_v37, 6.0 }
  0xf7   : > { %v1329_v47 = vmax.f32 %v1265_v38, 0.0  ;;  %v1270_v48 = vadd.f32 %v2330_v44, %v2551_v34  ;;  %v827_v49 = vpop.f32.mrf.mxu0  ;;  %v955_v54 = vpop.f32.mrf.mxu1 }
  0xf8   : > { %v2089_v51 = vpack.c.bf16 %v1363_v41, %v1362_v40  ;;  %v1361_v52 = vmin.f32 %v1297_v42, 6.0  ;;  %v1236_v53 = vadd.f32 %v2551_v34, %v827_v49  ;;  %v2169_v56 = vpack.c.bf16 %v1395_v46, %v1394_v45 }
  0xf9   : > { %v1393_v57 = vmin.f32 %v1329_v47, 6.0  ;;  %v1268_v58 = vadd.f32 %v2551_v34, %v955_v54  ;;  %v2299_v59 = vpop.f32.mrf.mxu0  ;;  %v1302_v61 = vmax.f32 %v1238_v43, 0.0  ;;  %v2331_v63 = vpop.f32.mrf.mxu1  ;;  %v1334_v1 = vmax.f32 %v1270_v48, 0.0 }
  0xfa   : > { %2217 = vst [vmem:[%s2567_s29 + $0x38] sm:$0xff] %v2089_v51   ;;  %v2084_v60 = vpack.c.bf16 %v1361_v52, %v1360_v50  ;;  %v1239_v62 = vadd.f32 %v2299_v59, %v2551_v34  ;;  %2233 = vst [vmem:[%s2567_s29 + $0xb8] sm:$0xff] %v2169_v56   ;;  %v1271_v2 = vadd.f32 %v2331_v63, %v2551_v34  ;;  %v1300_v4 = vmax.f32 %v1236_v53, 0.0 }
  0xfb   : > { %v2164_v0 = vpack.c.bf16 %v1393_v57, %v1392_v55  ;;  %v830_v3 = vpop.f32.mrf.mxu0  ;;  %v958_v7 = vpop.f32.mrf.mxu1  ;;  %v1332_v8 = vmax.f32 %v1268_v58, 0.0  ;;  %v1366_v12 = vmin.f32 %v1302_v61, 6.0  ;;  %v1398_v17 = vmin.f32 %v1334_v1, 6.0 }
  0xfc   : > { %2216 = vst [vmem:[%s2567_s29 + $0x30] sm:$0xff] %v2084_v60   ;;  %v1303_v5 = vmax.f32 %v1239_v62, 0.0  ;;  %v1237_v6 = vadd.f32 %v2551_v34, %v830_v3  ;;  %v1335_v9 = vmax.f32 %v1271_v2, 0.0  ;;  %v1269_v10 = vadd.f32 %v2551_v34, %v958_v7 }
  0xfd   : > { %2232 = vst [vmem:[%s2567_s29 + $0xb0] sm:$0xff] %v2164_v0   ;;  %v2302_v11 = vpop.f32.mrf.mxu0  ;;  %v2334_v16 = vpop.f32.mrf.mxu1  ;;  %v1364_v22 = vmin.f32 %v1300_v4, 6.0  ;;  %v1396_v27 = vmin.f32 %v1332_v8, 6.0 }
  0xfe   : > { %v1367_v13 = vmin.f32 %v1303_v5, 6.0  ;;  %v1301_v14 = vmax.f32 %v1237_v6, 0.0  ;;  %v1242_v15 = vadd.f32 %v2302_v11, %v2551_v34  ;;  %v1399_v18 = vmin.f32 %v1335_v9, 6.0 }
  0xff   : > { %v1333_v19 = vmax.f32 %v1269_v10, 0.0  ;;  %v1274_v20 = vadd.f32 %v2334_v16, %v2551_v34  ;;  %v843_v21 = vpop.f32.mrf.mxu0  ;;  %v971_v26 = vpop.f32.mrf.mxu1 }
 0x100   : > { %v2099_v23 = vpack.c.bf16 %v1367_v13, %v1366_v12  ;;  %v1365_v24 = vmin.f32 %v1301_v14, 6.0  ;;  %v1240_v25 = vadd.f32 %v2551_v34, %v843_v21  ;;  %v2179_v28 = vpack.c.bf16 %v1399_v18, %v1398_v17 }
 0x101   : > { %v1397_v29 = vmin.f32 %v1333_v19, 6.0  ;;  %v1272_v30 = vadd.f32 %v2551_v34, %v971_v26  ;;  %v2303_v31 = vpop.f32.mrf.mxu0  ;;  %v1306_v33 = vmax.f32 %v1242_v15, 0.0  ;;  %v2335_v36 = vpop.f32.mrf.mxu1  ;;  %v1338_v38 = vmax.f32 %v1274_v20, 0.0 }
 0x102   : > { %2219 = vst [vmem:[%s2567_s29 + $0x48] sm:$0xff] %v2099_v23   ;;  %v2094_v32 = vpack.c.bf16 %v1365_v24, %v1364_v22  ;;  %v1243_v35 = vadd.f32 %v2303_v31, %v2551_v34  ;;  %2235 = vst [vmem:[%s2567_s29 + $0xc8] sm:$0xff] %v2179_v28   ;;  %v1275_v39 = vadd.f32 %v2335_v36, %v2551_v34  ;;  %v1304_v41 = vmax.f32 %v1240_v25, 0.0 }
 0x103   : > { %v2174_v37 = vpack.c.bf16 %v1397_v29, %v1396_v27  ;;  %v846_v40 = vpop.f32.mrf.mxu0  ;;  %v974_v44 = vpop.f32.mrf.mxu1  ;;  %v1336_v45 = vmax.f32 %v1272_v30, 0.0  ;;  %v1370_v49 = vmin.f32 %v1306_v33, 6.0  ;;  %v1402_v54 = vmin.f32 %v1338_v38, 6.0 }
 0x104   : > { %2218 = vst [vmem:[%s2567_s29 + $0x40] sm:$0xff] %v2094_v32   ;;  %v1307_v42 = vmax.f32 %v1243_v35, 0.0  ;;  %v1241_v43 = vadd.f32 %v2551_v34, %v846_v40  ;;  %v1339_v46 = vmax.f32 %v1275_v39, 0.0  ;;  %v1273_v47 = vadd.f32 %v2551_v34, %v974_v44 }
 0x105   : > { %2234 = vst [vmem:[%s2567_s29 + $0xc0] sm:$0xff] %v2174_v37   ;;  %v2306_v48 = vpop.f32.mrf.mxu0  ;;  %v2338_v53 = vpop.f32.mrf.mxu1  ;;  %v1368_v59 = vmin.f32 %v1304_v41, 6.0  ;;  %v1400_v0 = vmin.f32 %v1336_v45, 6.0 }
 0x106   : > { %v1371_v50 = vmin.f32 %v1307_v42, 6.0  ;;  %v1305_v51 = vmax.f32 %v1241_v43, 0.0  ;;  %v1246_v52 = vadd.f32 %v2306_v48, %v2551_v34  ;;  %v1403_v55 = vmin.f32 %v1339_v46, 6.0 }
 0x107   : > { %v1337_v56 = vmax.f32 %v1273_v47, 0.0  ;;  %v1278_v57 = vadd.f32 %v2338_v53, %v2551_v34  ;;  %v859_v58 = vpop.f32.mrf.mxu0  ;;  %v987_v63 = vpop.f32.mrf.mxu1 }
 0x108   : > { %v2109_v60 = vpack.c.bf16 %v1371_v50, %v1370_v49  ;;  %v1369_v61 = vmin.f32 %v1305_v51, 6.0  ;;  %v1244_v62 = vadd.f32 %v2551_v34, %v859_v58  ;;  %v2189_v1 = vpack.c.bf16 %v1403_v55, %v1402_v54 }
 0x109   : > { %v1401_v2 = vmin.f32 %v1337_v56, 6.0  ;;  %v1276_v3 = vadd.f32 %v2551_v34, %v987_v63  ;;  %v2307_v4 = vpop.f32.mrf.mxu0  ;;  %v1310_v6 = vmax.f32 %v1246_v52, 0.0  ;;  %v2339_v8 = vpop.f32.mrf.mxu1  ;;  %v1342_v10 = vmax.f32 %v1278_v57, 0.0 }
 0x10a   : > { %2221 = vst [vmem:[%s2567_s29 + $0x58] sm:$0xff] %v2109_v60   ;;  %v2104_v5 = vpack.c.bf16 %v1369_v61, %v1368_v59  ;;  %v1247_v7 = vadd.f32 %v2307_v4, %v2551_v34  ;;  %2237 = vst [vmem:[%s2567_s29 + $0xd8] sm:$0xff] %v2189_v1   ;;  %v1279_v11 = vadd.f32 %v2339_v8, %v2551_v34  ;;  %v1308_v13 = vmax.f32 %v1244_v62, 0.0 }
 0x10b   : > { %v2184_v9 = vpack.c.bf16 %v1401_v2, %v1400_v0  ;;  %v862_v12 = vpop.f32.mrf.mxu0  ;;  %v990_v16 = vpop.f32.mrf.mxu1  ;;  %v1340_v17 = vmax.f32 %v1276_v3, 0.0  ;;  %v1374_v21 = vmin.f32 %v1310_v6, 6.0  ;;  %v1406_v26 = vmin.f32 %v1342_v10, 6.0 }
 0x10c   : > { %2220 = vst [vmem:[%s2567_s29 + $0x50] sm:$0xff] %v2104_v5   ;;  %v1311_v14 = vmax.f32 %v1247_v7, 0.0  ;;  %v1245_v15 = vadd.f32 %v2551_v34, %v862_v12  ;;  %v1343_v18 = vmax.f32 %v1279_v11, 0.0  ;;  %v1277_v19 = vadd.f32 %v2551_v34, %v990_v16 }
 0x10d   : > { %2236 = vst [vmem:[%s2567_s29 + $0xd0] sm:$0xff] %v2184_v9   ;;  %v2310_v20 = vpop.f32.mrf.mxu0  ;;  %v2342_v25 = vpop.f32.mrf.mxu1  ;;  %v1372_v31 = vmin.f32 %v1308_v13, 6.0  ;;  %v1404_v37 = vmin.f32 %v1340_v17, 6.0 }
 0x10e   : > { %v1375_v22 = vmin.f32 %v1311_v14, 6.0  ;;  %v1309_v23 = vmax.f32 %v1245_v15, 0.0  ;;  %v1250_v24 = vadd.f32 %v2310_v20, %v2551_v34  ;;  %v1407_v27 = vmin.f32 %v1343_v18, 6.0 }
 0x10f   : > { %v1341_v28 = vmax.f32 %v1277_v19, 0.0  ;;  %v1282_v29 = vadd.f32 %v2342_v25, %v2551_v34  ;;  %v875_v30 = vpop.f32.mrf.mxu0  ;;  %v1003_v36 = vpop.f32.mrf.mxu1 }
 0x110   : > { %v2119_v32 = vpack.c.bf16 %v1375_v22, %v1374_v21  ;;  %v1373_v33 = vmin.f32 %v1309_v23, 6.0  ;;  %v1248_v35 = vadd.f32 %v2551_v34, %v875_v30  ;;  %v2199_v38 = vpack.c.bf16 %v1407_v27, %v1406_v26 }
 0x111   : > { %v1405_v39 = vmin.f32 %v1341_v28, 6.0  ;;  %v1280_v40 = vadd.f32 %v2551_v34, %v1003_v36  ;;  %v2311_v41 = vpop.f32.mrf.mxu0  ;;  %v1314_v43 = vmax.f32 %v1250_v24, 0.0  ;;  %v2343_v45 = vpop.f32.mrf.mxu1  ;;  %v1346_v47 = vmax.f32 %v1282_v29, 0.0 }
 0x112   : > { %2223 = vst [vmem:[%s2567_s29 + $0x68] sm:$0xff] %v2119_v32   ;;  %v2114_v42 = vpack.c.bf16 %v1373_v33, %v1372_v31  ;;  %v1251_v44 = vadd.f32 %v2311_v41, %v2551_v34  ;;  %2239 = vst [vmem:[%s2567_s29 + $0xe8] sm:$0xff] %v2199_v38   ;;  %v1283_v48 = vadd.f32 %v2343_v45, %v2551_v34  ;;  %v1312_v50 = vmax.f32 %v1248_v35, 0.0 }
 0x113   : > { %v2194_v46 = vpack.c.bf16 %v1405_v39, %v1404_v37  ;;  %v878_v49 = vpop.f32.mrf.mxu0  ;;  %v1006_v53 = vpop.f32.mrf.mxu1  ;;  %v1344_v54 = vmax.f32 %v1280_v40, 0.0  ;;  %v1378_v57 = vmin.f32 %v1314_v43, 6.0  ;;  %v1410_v60 = vmin.f32 %v1346_v47, 6.0 }
 0x114   : > { %2222 = vst [vmem:[%s2567_s29 + $0x60] sm:$0xff] %v2114_v42   ;;  %v1315_v51 = vmax.f32 %v1251_v44, 0.0  ;;  %v1249_v52 = vadd.f32 %v2551_v34, %v878_v49  ;;  %v1347_v55 = vmax.f32 %v1283_v48, 0.0  ;;  %v1281_v56 = vadd.f32 %v2551_v34, %v1006_v53 }
 0x115   : > { %2238 = vst [vmem:[%s2567_s29 + $0xe0] sm:$0xff] %v2194_v46   ;;  %v1376_v63 = vmin.f32 %v1312_v50, 6.0  ;;  %v1408_v2 = vmin.f32 %v1344_v54, 6.0 }
 0x116   : > { %v1379_v58 = vmin.f32 %v1315_v51, 6.0  ;;  %v1313_v59 = vmax.f32 %v1249_v52, 0.0  ;;  %v1411_v61 = vmin.f32 %v1347_v55, 6.0  ;;  %v1345_v62 = vmax.f32 %v1281_v56, 0.0 }
 0x118   : > { %v2129_v0 = vpack.c.bf16 %v1379_v58, %v1378_v57  ;;  %v1377_v1 = vmin.f32 %v1313_v59, 6.0  ;;  %v2209_v3 = vpack.c.bf16 %v1411_v61, %v1410_v60  ;;  %v1409_v4 = vmin.f32 %v1345_v62, 6.0 }
 0x11a   : > { %2225 = vst [vmem:[%s2567_s29 + $0x78] sm:$0xff] %v2129_v0   ;;  %v2124_v5 = vpack.c.bf16 %v1377_v1, %v1376_v63  ;;  %2241 = vst [vmem:[%s2567_s29 + $0xf8] sm:$0xff] %v2209_v3   ;;  %v2204_v6 = vpack.c.bf16 %v1409_v4, %v1408_v2 }
 0x11c   : > { %2224 = vst [vmem:[%s2567_s29 + $0x70] sm:$0xff] %v2124_v5   ;;  %2240 = vst [vmem:[%s2567_s29 + $0xf0] sm:$0xff] %v2204_v6  }
 0x11d PF: > { %s13_s14 = sadd.s32 1, %s2428_s14   ;;  %s2669_s12 = smov %s2424_s13 }
 0x11e   : > { %p10_p5 = scmp.ge.s32.totalorder %s13_s14, 6   ;;  %s2670_s13 = smov %s2672_s15 }
 0x120   :  { %12 = sbr.rel (!%p10_p5) target bundleno = 2 (0x2), region = 76 }

</bundles_post_ra>
